<compile_context>
chip_gen: v7x
topology: tpu7x:2x2x1
jax: 0.10.0
libtpu: 0.0.40
codegen_flags: <defaults>
</compile_context>

<pallas_src>
import jax
import jax.numpy as jnp
from jax.experimental import pallas as pl
from jax.experimental.pallas import tpu as pltpu

KH = KW = 3
PAD = 1


def _ensemble_conv_kernel(wmat_ref, bias_ref, patches_ref, out_ref):
    """One grid step: (Cout, K) @ (K, tile_rows) + bias -> (Cout, tile_rows)."""
    out_ref[...] = (
        jnp.dot(wmat_ref[...], patches_ref[...],
                preferred_element_type=jnp.float32)
        + bias_ref[...]                      # (Cout, 1) lane-broadcast
    ).astype(out_ref.dtype)


def bagging_ensemble_forward(x, conv_weights, conv_biases, ensemble_weights,
                             *, tile_rows=2048):
    """x: (N, Cin, H, W) NCHW float32.
    conv_weights: (M, Cout, Cin, KH, KW) per-model conv filters (OIHW).
    conv_biases:  (M, Cout).
    ensemble_weights: (M,) bagging weights.
    Returns: (N, Cout, H, W) NCHW.
    """
    N, Cin, H, W = x.shape
    M, Cout = conv_weights.shape[0], conv_weights.shape[1]
    K = Cin * KH * KW
    R = N * H * W

    # --- fold the (linear) ensemble into one combined conv ------------------
    #   sum_m w_m * (W_m * x + b_m) = (sum_m w_m W_m) * x + (sum_m w_m b_m)
    w_comb = jnp.einsum("m,mokij->okij", ensemble_weights, conv_weights)
    b_comb = jnp.einsum("m,mo->o", ensemble_weights, conv_biases)
    wmat = w_comb.reshape(Cout, K)          # (Cout, K); K = Cin*KH*KW row-major
    bias = b_comb.reshape(Cout, 1)          # broadcast along lanes in-kernel

    # --- glue: im2col built directly in transposed (K, R) layout ------------
    # TODO(synk): this still materializes the (K, R) im2col matrix in HBM
    # (~9x the input bytes written + read back); in-kernel patch construction
    # from an NHWC-tiled input block would cut HBM traffic to ~2x input.
    xp = jnp.pad(x, ((0, 0), (0, 0), (PAD, PAD), (PAD, PAD)))
    cols = [xp[:, :, i:i + H, j:j + W] for i in range(KH) for j in range(KW)]
    patches = jnp.stack(cols, axis=2)               # (N, Cin, 9, H, W)
    patches = patches.transpose(1, 2, 0, 3, 4)      # (Cin, 9, N, H, W)
    patches_t = patches.reshape(K, R)               # (K, R): matches wmat K order

    # --- row tiling: multiple of 128 lanes, pad R so the grid divides evenly -
    tile_rows = max(128, min(tile_rows, pl.cdiv(R, 128) * 128))
    R_pad = pl.cdiv(R, tile_rows) * tile_rows
    if R_pad != R:
        patches_t = jnp.pad(patches_t, ((0, 0), (0, R_pad - R)))

    grid = (R_pad // tile_rows,)

    cost = pl.CostEstimate(
        flops=2 * R_pad * K * Cout,
        transcendentals=0,
        bytes_accessed=4 * (R_pad * K + K * Cout + Cout + R_pad * Cout),
    )

    out_flat = pl.pallas_call(
        _ensemble_conv_kernel,
        out_shape=jax.ShapeDtypeStruct((Cout, R_pad), x.dtype),
        grid=grid,
        in_specs=[
            # combined weight matrix: tiny, full slab, resident across the grid
            pl.BlockSpec((Cout, K), lambda i: (0, 0)),
            # combined bias (Cout, 1)
            pl.BlockSpec((Cout, 1), lambda i: (0, 0)),
            # im2col columns: tile along rows-of-the-image axis (lanes)
            pl.BlockSpec((K, tile_rows), lambda i: (0, i)),
        ],
        out_specs=pl.BlockSpec((Cout, tile_rows), lambda i: (0, i)),
        compiler_params=pltpu.CompilerParams(
            dimension_semantics=("parallel",)),
        cost_estimate=cost,
    )(wmat, bias, patches_t)

    # back to NCHW
    out = out_flat[:, :R].reshape(Cout, N, H, W).transpose(1, 0, 2, 3)
    return out


def _reference(x, conv_weights, conv_biases, ensemble_weights):
    """Pure-JAX reference of the same ensemble forward (per-model loop)."""
    out = jnp.zeros((x.shape[0], conv_weights.shape[1], x.shape[2], x.shape[3]),
                    dtype=jnp.float32)
    for m in range(conv_weights.shape[0]):
        y = jax.lax.conv_general_dilated(
            x, conv_weights[m], window_strides=(1, 1),
            padding=((PAD, PAD), (PAD, PAD)),
            dimension_numbers=("NCHW", "OIHW", "NCHW"))
        y = y + conv_biases[m][None, :, None, None]
        out = out + ensemble_weights[m] * y
    return out


if __name__ == "__main__":
    # M base models, each returning (conv(x), ...) -> ensemble weighted sum.
    N, Cin, H, W = 2, 4, 16, 16
    Cout = 4
    M = 3

    key = jax.random.PRNGKey(0)
    kx, kw, kb = jax.random.split(key, 3)
    x = jax.random.normal(kx, (N, Cin, H, W), dtype=jnp.float32)
    conv_weights = 0.1 * jax.random.normal(kw, (M, Cout, Cin, KH, KW),
                                           dtype=jnp.float32)
    conv_biases = 0.05 * jax.random.normal(kb, (M, Cout), dtype=jnp.float32)
    # default bagging weights: 1/len(models)
    ensemble_weights = jnp.full((M,), 1.0 / M, dtype=jnp.float32)

    out = bagging_ensemble_forward(x, conv_weights, conv_biases, ensemble_weights)
    out = jax.block_until_ready(out)

    ref = jax.block_until_ready(
        _reference(x, conv_weights, conv_biases, ensemble_weights))

    assert out.shape == (N, Cout, H, W)
    assert jnp.allclose(out, ref, atol=1e-4, rtol=1e-4), "mismatch vs reference"
    print("KERNEL_OK")
</pallas_src>

<mosaic_0001>
module attributes {stable_mosaic.version = 11 : i64} {
  func.func @_ensemble_conv_kernel(%arg0: i32, %arg1: memref<4x36xf32, #tpu.memory_space<vmem>>, %arg2: memref<4x1xf32, #tpu.memory_space<vmem>>, %arg3: memref<36x512xf32, #tpu.memory_space<vmem>>, %arg4: memref<4x512xf32, #tpu.memory_space<vmem>>) attributes {dimension_semantics = [#tpu.dimension_semantics<parallel>], iteration_bounds = array<i64: 1>, scalar_prefetch = 0 : i64, scratch_operands = 0 : i64, tpu.core_type = #tpu.core_type<tc>, window_params = [{pipeline_mode = #tpu.pipeline_mode<synchronous>, transform_indices = @transform_0, window_bounds = array<i64: 4, 36>}, {pipeline_mode = #tpu.pipeline_mode<synchronous>, transform_indices = @transform_1, window_bounds = array<i64: 4, 1>}, {transform_indices = @transform_2, window_bounds = array<i64: 36, 512>}, {transform_indices = @transform_3, window_bounds = array<i64: 4, 512>}]} {
    %c0 = arith.constant 0 : index
    %c0_0 = arith.constant 0 : index
    %0 = vector.load %arg1[%c0, %c0_0] : memref<4x36xf32, #tpu.memory_space<vmem>>, vector<4x36xf32>
    %c0_1 = arith.constant 0 : index
    %c0_2 = arith.constant 0 : index
    %1 = vector.load %arg3[%c0_1, %c0_2] : memref<36x512xf32, #tpu.memory_space<vmem>>, vector<36x512xf32>
    %cst = arith.constant dense<0.000000e+00> : vector<4x512xf32>
    %2 = tpu.matmul %0, %1, %cst {dimension_numbers = #tpu.dot_dimension_numbers<[1], [0], [0], [1], [0, 0, 1, 1], [], []>} : vector<4x36xf32>, vector<36x512xf32>, vector<4x512xf32> -> vector<4x512xf32>
    %c0_3 = arith.constant 0 : index
    %c0_4 = arith.constant 0 : index
    %3 = vector.load %arg2[%c0_3, %c0_4] : memref<4x1xf32, #tpu.memory_space<vmem>>, vector<4x1xf32>
    %4 = vector.broadcast %3 : vector<4x1xf32> to vector<4x512xf32>
    %5 = arith.addf %2, %4 : vector<4x512xf32>
    %c0_5 = arith.constant 0 : index
    %c0_6 = arith.constant 0 : index
    %6 = vector.load %arg4[%c0_5, %c0_6] : memref<4x512xf32, #tpu.memory_space<vmem>>, vector<4x512xf32>
    tpu.vector_store %arg4[%c0_5, %c0_6], %5 {strides = array<i32>} : memref<4x512xf32, #tpu.memory_space<vmem>>, vector<4x512xf32>,
    return
  }
  func.func @transform_0(%arg0: i32) -> (i32, i32) {
    %c0_i32 = arith.constant 0 : i32
    %c0_i32_0 = arith.constant 0 : i32
    %c0_i32_1 = arith.constant 0 : i32
    return %c0_i32, %c0_i32_0 : i32, i32
  }
  func.func @transform_1(%arg0: i32) -> (i32, i32) {
    %c0_i32 = arith.constant 0 : i32
    %c0_i32_0 = arith.constant 0 : i32
    %c0_i32_1 = arith.constant 0 : i32
    return %c0_i32, %c0_i32_0 : i32, i32
  }
  func.func @transform_2(%arg0: i32) -> (i32, i32) {
    %c0_i32 = arith.constant 0 : i32
    %c0_i32_0 = arith.constant 0 : i32
    return %c0_i32, %arg0 : i32, i32
  }
  func.func @transform_3(%arg0: i32) -> (i32, i32) {
    %c0_i32 = arith.constant 0 : i32
    %c0_i32_0 = arith.constant 0 : i32
    return %c0_i32, %arg0 : i32, i32
  }
}

</mosaic_0001>

<bundles_post_ra>
// kernel: tpu_custom_call.1
= control target key start
LH: loop header
LB: loop body
LE: loop exit
PB: predicated region body
PF: predicated region fallthrough
CT: control target
= control target key end

     0   :  { %8 = vsyncpa [#allocation3], 0  ;;  %s373_s0 = inlined_call_operand.vmem [shape: f32[4,36], index: 0, kind: input, shape index: {}]   ;;  %s374_s1 = inlined_call_operand.vmem [shape: f32[4,1], index: 1, kind: input, shape index: {}]   ;;  %s375_s2 = inlined_call_operand.hbm [shape: f32[36,512], index: 2, kind: input, shape index: {}]   ;;  %s376_s3 = inlined_call_operand.hbm [shape: f32[4,512], index: 3, kind: output, shape index: {}]  }
   0x1   :  { %9 = vsyncpa [#allocation4], 0  ;;  %s317_s12 = smov [#allocation2]   ;;  %s269_s16 = scalar_lea.hbm %s375_s2, 2560 }
   0x2   :  { %s19_s13 = sshll.u32 %s317_s12, 4  ;;  %p270_p0 = scmp.ne.s32.totalorder %s375_s2, %s269_s16  ;;  %s20_s13 = int_to_ptr.vmem [resolvable:$true] %s19_s13 }
   0x3   :  { %p273_p1 = scmp.lt.u32.totalorder %s269_s16, %s375_s2 }
   0x5   :  { %p275_p2 = pnand %p273_p1, %p270_p0 }
   0x7   :  { %278 = shalt.err (!%p275_p2)
}
   0x8   :  { %s279_s21 = scalar_lea.vmem %s20_s13, 2560  ;;  %p284_p4 = scmp.lt.s32.totalorder %s20_s13, %s20_s13 }
   0x9   :  { %p280_p3 = scmp.ne.s32.totalorder %s20_s13, %s279_s21  ;;  %p285_p5 = scmp.lt.s32.totalorder %s279_s21, %s279_s21 }
   0xb   :  { %p286_p6 = por %p285_p5, %p284_p4 }
   0xd   :  { %p287_p7 = pnand %p286_p6, %p280_p3 }
   0xf   :  { %290 = shalt.err (!%p287_p7)
}
  0x10   :  { %s318_s22 = smov 512   ;;  %s319_s23 = smov 32  }
  0x11   :  { %25 = dma.hbm_to_vmem [thread:$0]  %s375_s2, 2560, %s20_s13, [#allocation3], %s318_s22, %s318_s22, %s319_s23  }
  0x12   :  { %313 = dma.done.wait [#allocation3], 2560  }
  0x13   :  { %314 = vsyncadd [#allocation3], 4294964736  ;;  %v320_v0 = vmov 0.0   ;;  %v321_v1 = vmov 0   ;;  %v31_v2 = vld [vmem:[#allocation2 + $0x8] sm:$0xff]  ;;  %v33_v4 = vld [vmem:[#allocation2 + $0x18] sm:$0xff] }
  0x14   :  { %137 = vmatprep.mubr.f32.mxu0 %v320_v0  ;;  %208 = vmatprep.mubr.f32.mxu1 %v320_v0  ;;  %v35_v3 = vld [vmem:[#allocation2 + $0x28] sm:$0xff]  ;;  %v37_v6 = vld [vmem:[#allocation2 + $0x38] sm:$0xff]  ;;  %v30_v7 = vld [vmem:[#allocation2] sm:$0xff]  ;;  %vm60_vm0 = vcmask 1043456   ;;  %vm56_vm1 = vcmask 293888  }
  0x15   :  { %268 = vset.pattern.permute.xlu0 %v321_v1  ;;  %v246_v5 = vpack.c.bf16 %v35_v3, %v31_v2  ;;  %v34_v8 = vld [vmem:[#allocation2 + $0x20] sm:$0xff]  ;;  %v254_v9 = vpack.c.bf16 %v37_v6, %v33_v4  ;;  %v32_v11 = vld [vmem:[#allocation2 + $0x10] sm:$0xff]  ;;  %v39_v13 = vld [vmem:[#allocation2 + $0x48] sm:$0xff] }
  0x16   :  { %v248_v10 = vpack.c.bf16 %v34_v8, %v30_v7  ;;  %v36_v12 = vld [vmem:[#allocation2 + $0x30] sm:$0xff]  ;;  %v43_v15 = vld [vmem:[#allocation2 + $0x68] sm:$0xff]  ;;  %v41_v16 = vld [vmem:[#allocation2 + $0x58] sm:$0xff] }
  0x17   :  { %247 = vmatprep.subr.bf16.mxu0 %v246_v5  ;;  %v256_v14 = vpack.c.bf16 %v36_v12, %v32_v11  ;;  %v45_v17 = vld [vmem:[#allocation2 + $0x78] sm:$0xff]  ;;  %255 = vmatprep.subr.bf16.mxu1 %v254_v9  ;;  %v250_v18 = vpack.c.bf16 %v43_v15, %v39_v13  ;;  %v38_v20 = vld [vmem:[#allocation2 + $0x40] sm:$0xff]  ;;  %v40_v22 = vld [vmem:[#allocation2 + $0x50] sm:$0xff] }
  0x18   :  { %249 = vmatpush1.bf16.msra.mxu0 %v248_v10  ;;  %v258_v19 = vpack.c.bf16 %v45_v17, %v41_v16  ;;  %v42_v21 = vld [vmem:[#allocation2 + $0x60] sm:$0xff]  ;;  %v44_v24 = vld [vmem:[#allocation2 + $0x70] sm:$0xff]  ;;  %v47_v26 = vld [vmem:[#allocation2 + $0x88] sm:$0xf] }
  0x19   :  { %257 = vmatpush1.bf16.msra.mxu1 %v256_v14  ;;  %v252_v23 = vpack.c.bf16 %v42_v21, %v38_v20  ;;  %251 = vmatprep.subr.bf16.mxu0 %v250_v18  ;;  %v260_v25 = vpack.c.bf16 %v44_v24, %v40_v22  ;;  %v49_v27 = vld [vmem:[#allocation2 + $0x98] sm:$0xf]  ;;  %v50_v28 = vld [vmem:[%s374_s1] sm:$0xf]  ;;  %v48_v30 = vld [vmem:[#allocation2 + $0x90] sm:$0xf] }
  0x1a   :  { %259 = vmatprep.subr.bf16.mxu1 %v258_v19  ;;  %53 = vperm.xlu0 %268, %v50_v28   ;;  %v46_v29 = vld [vmem:[#allocation2 + $0x80] sm:$0xf]  ;;  %s322_s1 = smov [#allocation5]  }
  0x1b   :  { %v29_v31 = vld [vmem:[%s373_s0] sm:$0xf]  ;;  %s231_s29 = sshll.u32 %s322_s1, 4  ;;  %s232_s29 = int_to_ptr.vmem [resolvable:$true] %s231_s29 }
  0x1c   :  { %253 = vmatpush1.bf16.msra.mxu0 %v252_v23  ;;  %s291_s0 = scalar_lea.vmem %s232_s29, 256  ;;  %p296_p9 = scmp.lt.s32.totalorder %s232_s29, %s232_s29 }
  0x1d   :  { %261 = vmatpush1.bf16.msra.mxu1 %v260_v25  ;;  %240 = vmatprep.subr.msk.mxu0 %vm60_vm0, %v47_v26  ;;  %p292_p8 = scmp.ne.s32.totalorder %s232_s29, %s291_s0  ;;  %p297_p10 = scmp.lt.s32.totalorder %s291_s0, %s291_s0 }
  0x1e   :  { %243 = vmatprep.subr.msk.mxu1 %vm60_vm0, %v49_v27 }
  0x1f   :  { %p298_p11 = por %p297_p10, %p296_p9 }
  0x20   :  { %241 = vmatpush1.msk.msra.mxu0 %vm60_vm0, %v46_v29 }
  0x21   :  { %244 = vmatpush1.msk.msra.mxu1 %vm60_vm0, %v48_v30  ;;  %242 = vmatmul.mubr.msk.f32.vlgmr.msra.gmra.mrb[0].mxu0 %vm56_vm1, %v29_v31  ;;  %p299_p12 = pnand %p298_p11, %p292_p8 }
  0x22   :  { %245 = vmatmul.mubr.msk.f32.vlgmr.msra.gmra.mrb[0].mxu1 %vm56_vm1, %v29_v31 }
  0x99   :  { %v54_v32 = vpop.permute.xlu0 %53 }
  0xf4   :  { %v139_v33 = vpop.f32.mrb[0].mxu0 }
  0xf5   :  { %v140_v34 = vadd.f32 %v139_v33, %v54_v32  ;;  %v210_v35 = vpop.f32.mrb[0].mxu1  ;;  %v141_v36 = vpop.f32.mrb[1].mxu0 }
  0xf6   :  { %v211_v37 = vadd.f32 %v210_v35, %v54_v32  ;;  %v142_v38 = vadd.f32 %v141_v36, %v54_v32  ;;  %v212_v39 = vpop.f32.mrb[1].mxu1 }
  0xf7   :  { %v213_v40 = vadd.f32 %v212_v39, %v54_v32 }
  0xf8   :  { %v219_v41 = vcombine.low %v140_v34, %v142_v38 }
  0xf9   :  { %v220_v42 = vcombine.low %v211_v37, %v213_v40 }
  0xfa   :  { %223 = vst [vmem:[#allocation5] sm:$0xff] %v219_v41 }
  0xfb   :  { %224 = vst [vmem:[#allocation5 + $0x8] sm:$0xff] %v220_v42 }
  0xfc   :  { %302 = shalt.err (!%p299_p12)
}
  0xfd   :  { %s303_s5 = scalar_lea.hbm %s376_s3, 256 }
  0xfe   :  { %p304_p13 = scmp.ne.s32.totalorder %s376_s3, %s303_s5  ;;  %p307_p0 = scmp.lt.u32.totalorder %s303_s5, %s376_s3 }
 0x100   :  { %p309_p1 = pnand %p307_p0, %p304_p13 }
 0x102   :  { %312 = shalt.err (!%p309_p1)
}
 0x103   :  { %234 = dma.vmem_to_hbm [thread:$0]  %s232_s29, 256, %s376_s3, [#allocation4]  }
 0x104   :  { %315 = dma.done.wait [#allocation4], 256  }
 0x105   :  { %316 = vsyncadd [#allocation4], 4294967040 }
 0x106   :  { %238 = vsyncpa [#allocation3], 1 }
 0x107   :  { %239 = vsyncpa [#allocation4], 1 }

</bundles_post_ra>
